<compile_context>
chip_gen: v6e
topology: v6e:2x2x1
jax: 0.10.0
libtpu: 0.0.40
codegen_flags: <defaults>
</compile_context>

<pallas_src>
import functools

import jax
import jax.numpy as jnp
from jax.experimental import pallas as pl
from jax.experimental.pallas import tpu as pltpu


def _rmsnorm_kernel(x_ref, w_ref, o_ref, *, eps, inv_dim):
    # x_ref: (tile_rows, dim) in input dtype
    # w_ref: (1, dim) float32 weight (broadcast over rows)
    x32 = x_ref[...].astype(jnp.float32)                         # use #1 of the cast
    # sum * (1/dim): static constant -> one VPU multiply.
    ms = jnp.sum(x32 * x32, axis=-1, keepdims=True) * inv_dim    # x.pow(2).mean(-1)
    inv = jax.lax.rsqrt(ms + eps)                                 # rsqrt on the EUP slot
    # Recompute the cast at the second use site (instead of reusing x32) so the
    # compiler need not keep a full-block f32 upcast live across the reduction.
    normed = (x_ref[...].astype(jnp.float32) * inv).astype(x_ref.dtype)   # .type_as(x)
    o_ref[...] = (normed * w_ref[...]).astype(o_ref.dtype)        # * weight (f32)


def _sublane_packing(dtype):
    # Rows per packed sublane: 8 for 4-byte, 16 for 2-byte, 32 for 1-byte dtypes.
    itemsize = jnp.dtype(dtype).itemsize
    return 8 * max(1, 4 // itemsize)


def _chip_budgets():
    """(vmem_limit_bytes, target_block_bytes) chosen from the local chip's VMEM."""
    vmem_limit = 32 * 1024 * 1024
    target_block = 2 * 1024 * 1024
    try:
        info = pltpu.get_tpu_info()
        vmem_cap = getattr(info, "vmem_capacity_bytes", None)
        if vmem_cap is not None and vmem_cap <= 64 * 1024 * 1024:
            # v7x-class: 64 MiB physical VMEM per TC, ~3.2 TB/s HBM per TC.
            # Bigger blocks amortize per-step overhead; stay <~75% of physical.
            vmem_limit = 48 * 1024 * 1024
            target_block = 8 * 1024 * 1024
    except Exception:
        pass  # conservative defaults (safe on v5e's 16 MiB scoped default too)
    return vmem_limit, target_block


def _pick_tile_rows(rows, dim, in_dtype, out_dtype, vmem_limit_bytes,
                    target_block_bytes):
    """Pick a row tile from the *total* pipelined VMEM footprint.

    Per row we account for the double-buffered input block, the double-buffered
    output block, and ~2x dim*4 bytes of f32 intermediates, and keep the sum
    under ~75% of the requested VMEM limit.  The tile is additionally capped at
    target_block_bytes of *input* so per-grid-step DMA stays comfortably above
    the fixed ~0.35 us step overhead without ballooning.
    """
    packing = max(_sublane_packing(in_dtype), _sublane_packing(out_dtype))
    in_bytes_per_row = dim * jnp.dtype(in_dtype).itemsize
    out_bytes_per_row = dim * jnp.dtype(out_dtype).itemsize
    temp_bytes_per_row = 2 * dim * 4  # f32 intermediates inside the kernel body
    per_row_pipelined = 2 * (in_bytes_per_row + out_bytes_per_row) + temp_bytes_per_row

    budget_rows = (int(0.75 * vmem_limit_bytes)) // max(per_row_pipelined, 1)
    target_rows = max(1, target_block_bytes // max(in_bytes_per_row, 1))
    tile = max(packing, min(target_rows, budget_rows))
    tile = (tile // packing) * packing
    # Never allocate a block taller than the (rounded-up) row count.
    rows_rounded = ((rows + packing - 1) // packing) * packing
    tile = min(tile, rows_rounded)
    return max(tile, packing)


def rmsnorm(x, weight, eps=1e-6, *, tile_rows=None, out_dtype=None):
    """RMSNorm over the last axis of x. weight has shape (dim,).

    out_dtype=None keeps the input dtype on the write path (bandwidth-optimal;
    all math is f32 inside the kernel).  Pass out_dtype=jnp.float32 to match
    PyTorch's f32 promotion exactly for low-precision inputs.
    """
    orig_shape = x.shape
    dim = orig_shape[-1]
    rows = 1
    for s in orig_shape[:-1]:
        rows *= s
    x2 = x.reshape(rows, dim)
    w2 = weight.reshape(1, dim).astype(jnp.float32)

    if out_dtype is None:
        out_dtype = x.dtype

    vmem_limit_bytes, target_block_bytes = _chip_budgets()
    if tile_rows is None:
        tile_rows = _pick_tile_rows(rows, dim, x2.dtype, out_dtype,
                                    vmem_limit_bytes, target_block_bytes)

    # Ragged last block handled by Pallas (OOB reads padded, OOB writes masked);
    # rows are independent so padded garbage rows never touch real outputs.
    grid = (pl.cdiv(rows, tile_rows),)

    kernel = functools.partial(_rmsnorm_kernel, eps=eps, inv_dim=1.0 / dim)

    out = pl.pallas_call(
        kernel,
        out_shape=jax.ShapeDtypeStruct((rows, dim), out_dtype),
        grid_spec=pltpu.PrefetchScalarGridSpec(
            num_scalar_prefetch=0,
            grid=grid,
            in_specs=[
                pl.BlockSpec((tile_rows, dim), lambda i: (i, 0)),
                # Weight block index is constant -> stays resident, not re-DMA'd.
                pl.BlockSpec((1, dim), lambda i: (0, 0)),
            ],
            out_specs=pl.BlockSpec((tile_rows, dim), lambda i: (i, 0)),
        ),
        compiler_params=pltpu.CompilerParams(
            # TODO(synk): on v7x, verify with xprof that both TensorCores get
            # grid steps; if not, switch this axis to pltpu.CORE_PARALLEL (or a
            # leading grid axis of size num_cores) to split the row stream.
            dimension_semantics=("parallel",),
            vmem_limit_bytes=vmem_limit_bytes,
        ),
    )(x2, w2)

    return out.reshape(orig_shape[:-1] + (dim,))


def rmsnorm_ref(x, weight, eps=1e-6):
    xf = x.astype(jnp.float32)
    inv = jax.lax.rsqrt(jnp.mean(xf * xf, axis=-1, keepdims=True) + eps)
    normed = (xf * inv).astype(x.dtype)
    return normed * weight.astype(jnp.float32)


if __name__ == "__main__":
    key = jax.random.PRNGKey(0)

    # --- Case 1: f32, shapes implied by the module (batch=2, seq=8, hidden=32).
    batch, seq, hidden = 2, 8, 32
    x = jax.random.normal(key, (batch, seq, hidden), dtype=jnp.float32)
    weight = jnp.ones((hidden,), dtype=jnp.float32)  # nn.Parameter(torch.ones(dim))

    out = jax.block_until_ready(rmsnorm(x, weight, eps=1e-6))
    ref = rmsnorm_ref(x, weight, eps=1e-6)
    assert out.shape == x.shape
    assert out.dtype == x.dtype
    assert jnp.allclose(out, ref, atol=1e-5, rtol=1e-5)

    # --- Case 2: ragged grid (rows % tile_rows != 0) to lock in the masking path.
    k2 = jax.random.PRNGKey(1)
    xr = jax.random.normal(k2, (2, 10, hidden), dtype=jnp.float32)  # rows=20
    outr = jax.block_until_ready(rmsnorm(xr, weight, eps=1e-6, tile_rows=8))
    refr = rmsnorm_ref(xr, weight, eps=1e-6)
    assert jnp.allclose(outr, refr, atol=1e-5, rtol=1e-5)

    # --- Case 3: bf16 input with bf16 writeback default (lane-dense dim=128).
    k3 = jax.random.PRNGKey(2)
    hb = 128
    xb = jax.random.normal(k3, (2, 16, hb), dtype=jnp.bfloat16)
    wb = jnp.ones((hb,), dtype=jnp.float32)
    outb = jax.block_until_ready(rmsnorm(xb, wb, eps=1e-6))
    assert outb.dtype == jnp.bfloat16
    refb = rmsnorm_ref(xb, wb, eps=1e-6).astype(jnp.bfloat16)
    assert jnp.allclose(outb.astype(jnp.float32), refb.astype(jnp.float32),
                        atol=3e-2, rtol=3e-2)

    print("KERNEL_OK")
</pallas_src>

<mosaic_0001>
module attributes {stable_mosaic.version = 11 : i64} {
  func.func @_rmsnorm_kernel(%arg0: i32, %arg1: memref<16x32xf32, #tpu.memory_space<vmem>>, %arg2: memref<1x32xf32, #tpu.memory_space<vmem>>, %arg3: memref<16x32xf32, #tpu.memory_space<vmem>>) attributes {dimension_semantics = [#tpu.dimension_semantics<parallel>], iteration_bounds = array<i64: 1>, scalar_prefetch = 0 : i64, scratch_operands = 0 : i64, tpu.core_type = #tpu.core_type<tc>, window_params = [{transform_indices = @transform_0, window_bounds = array<i64: 16, 32>}, {pipeline_mode = #tpu.pipeline_mode<synchronous>, transform_indices = @transform_1, window_bounds = array<i64: 1, 32>}, {transform_indices = @transform_2, window_bounds = array<i64: 16, 32>}]} {
    %c0 = arith.constant 0 : index
    %c0_0 = arith.constant 0 : index
    %0 = vector.load %arg1[%c0, %c0_0] : memref<16x32xf32, #tpu.memory_space<vmem>>, vector<16x32xf32>
    %1 = arith.mulf %0, %0 : vector<16x32xf32>
    %cst = arith.constant dense<0.000000e+00> : vector<16xf32>
    %2 = vector.multi_reduction <add>, %1, %cst [1] : vector<16x32xf32> to vector<16xf32>
    %3 = vector.shape_cast %2 : vector<16xf32> to vector<16x1xf32>
    %cst_1 = arith.constant 3.125000e-02 : f32
    %4 = vector.broadcast %cst_1 : f32 to vector<16x1xf32>
    %5 = arith.mulf %3, %4 : vector<16x1xf32>
    %cst_2 = arith.constant 9.99999997E-7 : f32
    %6 = vector.broadcast %cst_2 : f32 to vector<16x1xf32>
    %7 = arith.addf %5, %6 : vector<16x1xf32>
    %8 = math.rsqrt %7 : vector<16x1xf32>
    %c0_3 = arith.constant 0 : index
    %c0_4 = arith.constant 0 : index
    %9 = vector.load %arg1[%c0_3, %c0_4] : memref<16x32xf32, #tpu.memory_space<vmem>>, vector<16x32xf32>
    %10 = vector.broadcast %8 : vector<16x1xf32> to vector<16x32xf32>
    %11 = arith.mulf %9, %10 : vector<16x32xf32>
    %c0_5 = arith.constant 0 : index
    %c0_6 = arith.constant 0 : index
    %12 = vector.load %arg2[%c0_5, %c0_6] : memref<1x32xf32, #tpu.memory_space<vmem>>, vector<1x32xf32>
    %13 = vector.broadcast %12 : vector<1x32xf32> to vector<16x32xf32>
    %14 = arith.mulf %11, %13 : vector<16x32xf32>
    %c0_7 = arith.constant 0 : index
    %c0_8 = arith.constant 0 : index
    %15 = vector.load %arg3[%c0_7, %c0_8] : memref<16x32xf32, #tpu.memory_space<vmem>>, vector<16x32xf32>
    tpu.vector_store %arg3[%c0_7, %c0_8], %14 {strides = array<i32>} : memref<16x32xf32, #tpu.memory_space<vmem>>, vector<16x32xf32>,
    return
  }
  func.func @transform_0(%arg0: i32) -> (i32, i32) {
    %c0_i32 = arith.constant 0 : i32
    %c0_i32_0 = arith.constant 0 : i32
    return %arg0, %c0_i32 : i32, i32
  }
  func.func @transform_1(%arg0: i32) -> (i32, i32) {
    %c0_i32 = arith.constant 0 : i32
    %c0_i32_0 = arith.constant 0 : i32
    %c0_i32_1 = arith.constant 0 : i32
    return %c0_i32, %c0_i32_0 : i32, i32
  }
  func.func @transform_2(%arg0: i32) -> (i32, i32) {
    %c0_i32 = arith.constant 0 : i32
    %c0_i32_0 = arith.constant 0 : i32
    return %arg0, %c0_i32 : i32, i32
  }
}

</mosaic_0001>

<bundles_post_ra>
// kernel: tpu_custom_call.1
= control target key start
LH: loop header
LB: loop body
LE: loop exit
PB: predicated region body
PF: predicated region fallthrough
CT: control target
= control target key end

     0   :  { %7 = vsyncpa [#allocation3], 0  ;;  %s164_s0 = inlined_call_operand.hbm [shape: f32[16,32], index: 0, kind: input, shape index: {}]   ;;  %s165_s1 = inlined_call_operand.vmem [shape: f32[1,32], index: 1, kind: input, shape index: {}]   ;;  %s166_s2 = inlined_call_operand.hbm [shape: f32[16,32], index: 2, kind: output, shape index: {}]  }
   0x1   :  { %8 = vsyncpa [#allocation4], 0  ;;  %s126_s9 = smov [#allocation2]  }
   0x2   :  { %s14_s10 = sshll.u32 %s126_s9, 4  ;;  %s15_s10 = int_to_ptr.vmem [resolvable:$true] %s14_s10 }
   0x3   :  { %s90_s11 = scalar_lea.vmem %s15_s10, 256  ;;  %p95_p1 = scmp.lt.s32.totalorder %s15_s10, %s15_s10 }
   0x4   :  { %p91_p0 = scmp.ne.s32.totalorder %s15_s10, %s90_s11  ;;  %p96_p2 = scmp.lt.s32.totalorder %s90_s11, %s90_s11 }
   0x6   :  { %p97_p3 = por %p96_p2, %p95_p1 }
   0x8   :  { %p98_p4 = pnand %p97_p3, %p91_p0 }
   0xa   :  { %101 = shalt.err (!%p98_p4)
}
   0xb   :  { %s127_s12 = smov 128   ;;  %s128_s13 = smov 8  }
   0xc   :  { %20 = dma.hbm_to_vmem [thread:$0]  %s164_s0, 256, %s15_s10, [#allocation3], %s127_s12, %s127_s12, %s128_s13  }
   0xd   :  { %122 = dma.done.wait [#allocation3], 256  }
   0xe   :  { %123 = vsyncadd [#allocation3], 4294967040  ;;  %v26_v0 = vld [vmem:[#allocation2] sm:$0xff]  ;;  %vm30_vm0 = vcmask 261120   ;;  %v27_v1 = vld [vmem:[#allocation2 + $0x8] sm:$0xff]  ;;  %s129_s17 = smov [#allocation5]  }
   0xf   :  { %v28_v2 = vmul.f32 %v26_v0, %v26_v0  ;;  %v29_v3 = vmul.f32 %v27_v1, %v27_v1  ;;  %v73_v13 = vld [vmem:[%s165_s1] ss:$0 sm:$0xff]  ;;  %s61_s18 = sshll.u32 %s129_s17, 4  ;;  %s62_s18 = int_to_ptr.vmem [resolvable:$true] %s61_s18 }
  0x10   :  { %s102_s19 = scalar_lea.vmem %s62_s18, 256  ;;  %p107_p6 = scmp.lt.s32.totalorder %s62_s18, %s62_s18 }
  0x11   :  { %v31_v4 = vsel %vm30_vm0, %v28_v2, 0.0  ;;  %v34_v5 = vsel %vm30_vm0, %v29_v3, 0.0  ;;  %p103_p5 = scmp.ne.s32.totalorder %s62_s18, %s102_s19  ;;  %p108_p7 = scmp.lt.s32.totalorder %s102_s19, %s102_s19 }
  0x12   :  { %32 = vadd.xlane.f32.xlu0 %v31_v4 }
  0x13   :  { %p109_p8 = por %p108_p7, %p107_p6 }
  0x15   :  { %p110_p9 = pnand %p109_p8, %p103_p5 }
  0x16   :  { %35 = vadd.xlane.f32.xlu0 %v34_v5 }
  0x9b   :  { %v33_v6 = vpop.xlane.xlu0 %32 }
  0x9c   :  { %v37_v7 = vmul.f32 0.03125, %v33_v6 }
  0x9e   :  { %v39_v8 = vadd.f32 1e-06, %v37_v7 }
  0x9f   :  { %v36_v9 = vpop.xlane.xlu0 %35 }
  0xa0   :  { %78 = vrsqrt.f32 %v39_v8  ;;  %v38_v10 = vmul.f32 0.03125, %v36_v9 }
  0xa2   :  { %v40_v11 = vadd.f32 1e-06, %v38_v10 }
  0xa4   :  { %80 = vrsqrt.f32 %v40_v11 }
  0xad   :  { %v79_v12 = vpop.eup %78 }
  0xae   :  { %v43_v14 = vmul.f32 %v79_v12, %v26_v0 }
  0xb0   :  { %v52_v15 = vmul.f32 %v73_v13, %v43_v14 }
  0xb1   :  { %v81_v16 = vpop.eup %80 }
  0xb2   :  { %v44_v17 = vmul.f32 %v81_v16, %v27_v1  ;;  %54 = vst.msk [vmem:[#allocation5] sm:$0xff] %vm30_vm0, %v52_v15 }
  0xb4   :  { %v53_v18 = vmul.f32 %v73_v13, %v44_v17 }
  0xb6   :  { %55 = vst.msk [vmem:[#allocation5 + $0x8] sm:$0xff] %vm30_vm0, %v53_v18 }
  0xb7   :  { %113 = shalt.err (!%p110_p9)
}
  0xb8   :  { %67 = dma.vmem_to_hbm [thread:$0]  %s62_s18, 256, %s166_s2, [#allocation4], %s127_s12, %s127_s12, %s128_s13  }
  0xb9   :  { %124 = dma.done.wait [#allocation4], 256  }
  0xba   :  { %125 = vsyncadd [#allocation4], 4294967040 }
  0xbb   :  { %71 = vsyncpa [#allocation3], 1 }
  0xbc   :  { %72 = vsyncpa [#allocation4], 1 }

</bundles_post_ra>
